<compile_context>
chip_gen: v7x
topology: tpu7x:2x2x1
jax: 0.10.0
libtpu: 0.0.40
codegen_flags: <defaults>
</compile_context>

<pallas_src>
import functools

import jax
import jax.numpy as jnp
from jax import lax
from jax.experimental import pallas as pl
from jax.experimental.pallas import tpu as pltpu

ALPHA = 0.5
GAMMA = 1.0


def _round_up(x, m):
    return ((x + m - 1) // m) * m


def _focal_loss_kernel(n_ref, logit_ref, target_ref, out_ref, cols_ref, acc_ref,
                       *, steps_per_split, alpha, gamma):
    # n_ref:      (1,) int32 SMEM (scalar prefetch) -- true row count N
    # logit_ref:  (TILE, C) native dtype, VMEM
    # target_ref: (TILE, 1) int32, VMEM
    # out_ref:    (1, 8, 128) f32 VMEM -- per-split partial sum (resident over i)
    # cols_ref:   (TILE, C) int32 VMEM scratch -- column iota (built once/sweep)
    # acc_ref:    (TILE, 1) f32 VMEM scratch -- elementwise loss accumulator
    s = pl.program_id(0)          # split index ("parallel" axis)
    i = pl.program_id(1)          # row-block step within split ("arbitrary")
    tn, c = logit_ref.shape

    @pl.when(i == 0)
    def _init():
        cols_ref[...] = lax.broadcasted_iota(jnp.int32, (tn, c), 1)
        acc_ref[...] = jnp.zeros_like(acc_ref)

    x = logit_ref[...].astype(jnp.float32)             # (TILE, C)
    t = target_ref[...]                                 # (TILE, 1) int32

    # log-softmax along the class (lane) axis, reusing the shifted logits.
    m = jnp.max(x, axis=1, keepdims=True)
    xm = x - m
    sexp = jnp.sum(jnp.exp(xm), axis=1, keepdims=True)

    # Gather xm[r, target[r]] with a single select (no dynamic gather on TPU).
    # NOTE: out-of-range targets are silently wrong (torch.gather would raise).
    x_t = jnp.sum(jnp.where(cols_ref[...] == t, xm, 0.0), axis=1, keepdims=True)

    log_pt = x_t - jnp.log(sexp)                        # log softmax at target
    p_t = jnp.exp(log_pt)
    one_minus = 1.0 - p_t

    if gamma == 0.0:
        focal = jnp.ones_like(one_minus)
    elif gamma == 1.0:
        focal = one_minus                               # default: no pow at all
    elif float(gamma).is_integer() and gamma > 0.0:
        focal = one_minus
        for _ in range(int(gamma) - 1):
            focal = focal * one_minus
    else:
        # Guard log(0) so (1 - p_t) == 0 gives 0 instead of NaN.
        safe = jnp.maximum(one_minus, jnp.float32(1e-30))
        focal = jnp.where(one_minus > 0.0,
                          jnp.exp(jnp.float32(gamma) * jnp.log(safe)), 0.0)

    loss = (-alpha) * focal * log_pt                    # (TILE, 1)

    # Mask rows past the true N (ragged last block / clamped OOB blocks).
    row0 = (s * steps_per_split + i) * tn
    rows = row0 + lax.broadcasted_iota(jnp.int32, (tn, 1), 0)
    loss = jnp.where(rows < n_ref[0], loss, 0.0)

    acc_ref[...] += loss

    @pl.when(i == pl.num_programs(1) - 1)
    def _finalize():
        out_ref[...] = jnp.zeros(out_ref.shape, jnp.float32) + jnp.sum(acc_ref[...])


def mult_focal_loss(logit, target, *, alpha=ALPHA, gamma=GAMMA,
                    block_bytes=2 * 1024 * 1024, num_splits=2):
    """logit: (N, C) float (any dtype), target: (N,) int. Returns scalar f32 loss."""
    n, c = logit.shape
    itemsize = jnp.dtype(logit.dtype).itemsize

    # --- byte-based row tile (lane-padding aware) --------------------------
    lane_c = _round_up(c, 128)              # VMEM pads the class axis to 128 lanes
    logit_row = lane_c * itemsize           # bytes of one logits row in VMEM
    tile_want = max(8, (block_bytes // logit_row) // 8 * 8)
    # VMEM per tile-row: 2 double-buffered logit blocks + 2 target blocks
    # (int32, lane-padded) + iota scratch + accumulator.
    per_row_vmem = 2 * logit_row + 2 * 128 * 4 + lane_c * 4 + 128 * 4
    vmem_budget = 24 * 1024 * 1024          # headroom under the 32 MiB scoped cap
    tile_cap = max(8, (vmem_budget // per_row_vmem) // 8 * 8)
    tile = min(tile_want, tile_cap, _round_up(n, 8))

    steps_total = pl.cdiv(n, tile)          # ragged last block, no padding
    num_splits = max(1, min(num_splits, steps_total))
    steps_per_split = pl.cdiv(steps_total, num_splits)

    target_2d = target.astype(jnp.int32).reshape(n, 1)
    n_arr = jnp.array([n], dtype=jnp.int32)

    def row_block(s, i, n_sref):
        blk = s * steps_per_split + i
        return (jnp.minimum(blk, steps_total - 1), 0)   # clamp fully-OOB blocks

    kernel = functools.partial(
        _focal_loss_kernel, steps_per_split=steps_per_split,
        alpha=float(alpha), gamma=float(gamma))

    partials = pl.pallas_call(
        kernel,
        out_shape=jax.ShapeDtypeStruct((num_splits, 8, 128), jnp.float32),
        grid_spec=pltpu.PrefetchScalarGridSpec(
            num_scalar_prefetch=1,
            grid=(num_splits, steps_per_split),
            in_specs=[
                pl.BlockSpec((tile, c), row_block),      # logits, native dtype
                pl.BlockSpec((tile, 1), row_block),      # int32 targets
            ],
            out_specs=pl.BlockSpec((1, 8, 128), lambda s, i, n_sref: (s, 0, 0)),
            scratch_shapes=[
                pltpu.VMEM((tile, c), jnp.int32),        # column iota
                pltpu.VMEM((tile, 1), jnp.float32),      # loss accumulator
            ],
        ),
        compiler_params=pltpu.CompilerParams(
            dimension_semantics=("parallel", "arbitrary"),
            vmem_limit_bytes=32 * 1024 * 1024,
        ),
    )(n_arr, logit, target_2d)

    return jnp.sum(partials[:, 0, 0]) / jnp.float32(n)


if __name__ == "__main__":
    key = jax.random.PRNGKey(0)
    k1, k2, k3, k4 = jax.random.split(key, 4)

    def reference(logit, target):
        logit = logit.astype(jnp.float32)
        prob = jax.nn.softmax(logit, axis=1)
        p_t = jnp.take_along_axis(prob, target[:, None], axis=1)[:, 0]
        return jnp.mean(-ALPHA * jnp.power(1.0 - p_t, GAMMA) * jnp.log(p_t))

    # Case 1: single-block path (N=8, C=16), f32 logits.
    logit_a = jax.random.normal(k1, (8, 16), dtype=jnp.float32)
    target_a = jax.random.randint(k2, (8,), 0, 16, dtype=jnp.int32)
    loss_a = mult_focal_loss(logit_a, target_a)
    jax.block_until_ready(loss_a)
    ref_a = reference(logit_a, target_a)
    assert jnp.allclose(loss_a, ref_a, rtol=1e-5, atol=1e-6), (loss_a, ref_a)

    # Case 2: 2-way split + multi-step + ragged last block + OOB-block clamp
    # (N=20, tile=8 -> 3 real blocks over a (2,2) grid), bf16 logits.
    logit_b = jax.random.normal(k3, (20, 16), dtype=jnp.float32).astype(jnp.bfloat16)
    target_b = jax.random.randint(k4, (20,), 0, 16, dtype=jnp.int32)
    loss_b = mult_focal_loss(logit_b, target_b, block_bytes=2048)
    jax.block_until_ready(loss_b)
    ref_b = reference(logit_b, target_b)
    assert jnp.allclose(loss_b, ref_b, rtol=1e-5, atol=1e-5), (loss_b, ref_b)

    print("KERNEL_OK")
</pallas_src>

<mosaic_0001>
module attributes {stable_mosaic.version = 11 : i64} {
  func.func @_focal_loss_kernel(%arg0: i32, %arg1: i32, %arg2: memref<1xi32, #tpu.memory_space<smem>>, %arg3: memref<8x16xf32, #tpu.memory_space<vmem>>, %arg4: memref<8x1xi32, #tpu.memory_space<vmem>>, %arg5: memref<1x8x128xf32, #tpu.memory_space<vmem>>, %arg6: memref<8x16xi32, #tpu.memory_space<vmem>>, %arg7: memref<8x1xf32, #tpu.memory_space<vmem>>) attributes {dimension_semantics = [#tpu.dimension_semantics<parallel>, #tpu.dimension_semantics<arbitrary>], iteration_bounds = array<i64: 1, 1>, scalar_prefetch = 1 : i64, scratch_operands = 2 : i64, tpu.core_type = #tpu.core_type<tc>, window_params = [{transform_indices = @transform_0, window_bounds = array<i64: 8, 16>}, {transform_indices = @transform_1, window_bounds = array<i64: 8, 1>}, {transform_indices = @transform_2, window_bounds = array<i64: 1, 8, 128>}]} {
    %c0_i32 = arith.constant 0 : i32
    %0 = arith.cmpi eq, %arg1, %c0_i32 : i32
    %1 = arith.extui %0 : i1 to i32
    %c0_i32_0 = arith.constant 0 : i32
    %2 = arith.cmpi ne, %1, %c0_i32_0 : i32
    scf.if %2 {
      %44 = tpu.iota {dimensions = array<i32: 1>} : vector<8x16xi32>
      %c0_19 = arith.constant 0 : index
      %c0_20 = arith.constant 0 : index
      %45 = vector.load %arg6[%c0_19, %c0_20] : memref<8x16xi32, #tpu.memory_space<vmem>>, vector<8x16xi32>
      tpu.vector_store %arg6[%c0_19, %c0_20], %44 {strides = array<i32>} : memref<8x16xi32, #tpu.memory_space<vmem>>, vector<8x16xi32>,
      %cst_21 = arith.constant 0.000000e+00 : f32
      %46 = vector.broadcast %cst_21 : f32 to vector<8x1xf32>
      %c0_22 = arith.constant 0 : index
      %c0_23 = arith.constant 0 : index
      %47 = vector.load %arg7[%c0_22, %c0_23] : memref<8x1xf32, #tpu.memory_space<vmem>>, vector<8x1xf32>
      tpu.vector_store %arg7[%c0_22, %c0_23], %46 {strides = array<i32>} : memref<8x1xf32, #tpu.memory_space<vmem>>, vector<8x1xf32>,
    } else {
    }
    %c0 = arith.constant 0 : index
    %c0_1 = arith.constant 0 : index
    %3 = vector.load %arg3[%c0, %c0_1] : memref<8x16xf32, #tpu.memory_space<vmem>>, vector<8x16xf32>
    %c0_2 = arith.constant 0 : index
    %c0_3 = arith.constant 0 : index
    %4 = vector.load %arg4[%c0_2, %c0_3] : memref<8x1xi32, #tpu.memory_space<vmem>>, vector<8x1xi32>
    %cst = arith.constant dense<0xFF800000> : vector<8xf32>
    %5 = vector.multi_reduction <maximumf>, %3, %cst [1] : vector<8x16xf32> to vector<8xf32>
    %6 = vector.shape_cast %5 : vector<8xf32> to vector<8x1xf32>
    %7 = vector.broadcast %6 : vector<8x1xf32> to vector<8x16xf32>
    %8 = arith.subf %3, %7 : vector<8x16xf32>
    %9 = math.exp %8 : vector<8x16xf32>
    %cst_4 = arith.constant dense<0.000000e+00> : vector<8xf32>
    %10 = vector.multi_reduction <add>, %9, %cst_4 [1] : vector<8x16xf32> to vector<8xf32>
    %11 = vector.shape_cast %10 : vector<8xf32> to vector<8x1xf32>
    %c0_5 = arith.constant 0 : index
    %c0_6 = arith.constant 0 : index
    %12 = vector.load %arg6[%c0_5, %c0_6] : memref<8x16xi32, #tpu.memory_space<vmem>>, vector<8x16xi32>
    %13 = vector.broadcast %4 : vector<8x1xi32> to vector<8x16xi32>
    %14 = arith.cmpi eq, %12, %13 : vector<8x16xi32>
    %cst_7 = arith.constant 0.000000e+00 : f32
    %15 = vector.broadcast %cst_7 : f32 to vector<8x16xf32>
    %16 = arith.select %14, %8, %15 : vector<8x16xi1>, vector<8x16xf32>
    %cst_8 = arith.constant dense<0.000000e+00> : vector<8xf32>
    %17 = vector.multi_reduction <add>, %16, %cst_8 [1] : vector<8x16xf32> to vector<8xf32>
    %18 = vector.shape_cast %17 : vector<8xf32> to vector<8x1xf32>
    %19 = math.log %11 : vector<8x1xf32>
    %20 = arith.subf %18, %19 : vector<8x1xf32>
    %21 = math.exp %20 : vector<8x1xf32>
    %cst_9 = arith.constant 1.000000e+00 : f32
    %22 = vector.broadcast %cst_9 : f32 to vector<8x1xf32>
    %23 = arith.subf %22, %21 : vector<8x1xf32>
    %cst_10 = arith.constant -5.000000e-01 : f32
    %24 = vector.broadcast %cst_10 : f32 to vector<8x1xf32>
    %25 = arith.mulf %24, %23 : vector<8x1xf32>
    %26 = arith.mulf %25, %20 : vector<8x1xf32>
    %c1_i32 = arith.constant 1 : i32
    %27 = arith.muli %arg0, %c1_i32 : i32
    %28 = arith.addi %27, %arg1 : i32
    %c8_i32 = arith.constant 8 : i32
    %29 = arith.muli %28, %c8_i32 : i32
    %30 = tpu.iota {dimensions = array<i32: 0>} : vector<8x1xi32>
    %31 = vector.broadcast %29 : i32 to vector<8x1xi32>
    %32 = arith.addi %31, %30 : vector<8x1xi32>
    %c0_11 = arith.constant 0 : index
    %33 = memref.load %arg2[%c0_11] : memref<1xi32, #tpu.memory_space<smem>>
    %34 = vector.broadcast %33 : i32 to vector<8x1xi32>
    %35 = arith.cmpi slt, %32, %34 : vector<8x1xi32>
    %cst_12 = arith.constant 0.000000e+00 : f32
    %36 = vector.broadcast %cst_12 : f32 to vector<8x1xf32>
    %37 = arith.select %35, %26, %36 : vector<8x1xi1>, vector<8x1xf32>
    %c0_13 = arith.constant 0 : index
    %c0_14 = arith.constant 0 : index
    %38 = vector.load %arg7[%c0_13, %c0_14] : memref<8x1xf32, #tpu.memory_space<vmem>>, vector<8x1xf32>
    %39 = arith.addf %38, %37 : vector<8x1xf32>
    %c0_15 = arith.constant 0 : index
    %c0_16 = arith.constant 0 : index
    %40 = vector.load %arg7[%c0_15, %c0_16] : memref<8x1xf32, #tpu.memory_space<vmem>>, vector<8x1xf32>
    tpu.vector_store %arg7[%c0_15, %c0_16], %39 {strides = array<i32>} : memref<8x1xf32, #tpu.memory_space<vmem>>, vector<8x1xf32>,
    %c0_i32_17 = arith.constant 0 : i32
    %41 = arith.cmpi eq, %arg1, %c0_i32_17 : i32
    %42 = arith.extui %41 : i1 to i32
    %c0_i32_18 = arith.constant 0 : i32
    %43 = arith.cmpi ne, %42, %c0_i32_18 : i32
    scf.if %43 {
      %cst_19 = arith.constant 0.000000e+00 : f32
      %44 = vector.broadcast %cst_19 : f32 to vector<1x8x128xf32>
      %c0_20 = arith.constant 0 : index
      %c0_21 = arith.constant 0 : index
      %45 = vector.load %arg7[%c0_20, %c0_21] : memref<8x1xf32, #tpu.memory_space<vmem>>, vector<8x1xf32>
      %46 = vector.shape_cast %45 : vector<8x1xf32> to vector<1x8x1xf32>
      %cst_22 = arith.constant dense<0.000000e+00> : vector<1xf32>
      %47 = vector.multi_reduction <add>, %46, %cst_22 [1, 2] : vector<1x8x1xf32> to vector<1xf32>
      %48 = vector.shape_cast %47 : vector<1xf32> to vector<1x1x1xf32>
      %49 = vector.extract %48[0, 0, 0] : f32 from vector<1x1x1xf32>
      %50 = vector.broadcast %49 : f32 to vector<1x8x128xf32>
      %51 = arith.addf %44, %50 : vector<1x8x128xf32>
      %c0_23 = arith.constant 0 : index
      %c0_24 = arith.constant 0 : index
      %c0_25 = arith.constant 0 : index
      %52 = vector.load %arg5[%c0_23, %c0_24, %c0_25] : memref<1x8x128xf32, #tpu.memory_space<vmem>>, vector<1x8x128xf32>
      tpu.vector_store %arg5[%c0_23, %c0_24, %c0_25], %51 {strides = array<i32>} : memref<1x8x128xf32, #tpu.memory_space<vmem>>, vector<1x8x128xf32>,
    } else {
    }
    return
  }
  func.func @transform_0(%arg0: i32, %arg1: i32, %arg2: memref<1xi32, #tpu.memory_space<smem>>) -> (i32, i32) {
    %c1_i32 = arith.constant 1 : i32
    %0 = arith.muli %arg0, %c1_i32 : i32
    %1 = arith.addi %0, %arg1 : i32
    %c0_i32 = arith.constant 0 : i32
    %2 = arith.minsi %1, %c0_i32 : i32
    %c0_i32_0 = arith.constant 0 : i32
    %c0_i32_1 = arith.constant 0 : i32
    return %2, %c0_i32_0 : i32, i32
  }
  func.func @transform_1(%arg0: i32, %arg1: i32, %arg2: memref<1xi32, #tpu.memory_space<smem>>) -> (i32, i32) {
    %c1_i32 = arith.constant 1 : i32
    %0 = arith.muli %arg0, %c1_i32 : i32
    %1 = arith.addi %0, %arg1 : i32
    %c0_i32 = arith.constant 0 : i32
    %2 = arith.minsi %1, %c0_i32 : i32
    %c0_i32_0 = arith.constant 0 : i32
    %c0_i32_1 = arith.constant 0 : i32
    return %2, %c0_i32_0 : i32, i32
  }
  func.func @transform_2(%arg0: i32, %arg1: i32, %arg2: memref<1xi32, #tpu.memory_space<smem>>) -> (i32, i32, i32) {
    %c0_i32 = arith.constant 0 : i32
    %c0_i32_0 = arith.constant 0 : i32
    %c0_i32_1 = arith.constant 0 : i32
    return %arg0, %c0_i32, %c0_i32_0 : i32, i32, i32
  }
}

</mosaic_0001>

<bundles_post_ra>
// kernel: tpu_custom_call.1
= control target key start
LH: loop header
LB: loop body
LE: loop exit
PB: predicated region body
PF: predicated region fallthrough
CT: control target
= control target key end

     0   :  { %vm74_vm0 = vcmask 130048   ;;  %v72_v1 = vlaneseq  ;;  %s251_s0 = inlined_call_operand.<no memory space> [shape: s32[1], index: 0, kind: input, shape index: {}]   ;;  %s252_s1 = inlined_call_operand.vmem [shape: f32[8,16], index: 1, kind: input, shape index: {}]   ;;  %s253_s2 = inlined_call_operand.vmem [shape: s32[8,1], index: 2, kind: input, shape index: {}]   ;;  %s254_s3 = inlined_call_operand.hbm [shape: f32[1,8,128], index: 3, kind: output, shape index: {}]  }
   0x1   :  { %v78_v0 = vld [vmem:[%s252_s1] sm:$0xff] }
   0x2   :  { %9 = vsyncpa [#allocation7], 0  ;;  %v81_v2 = vsel %vm74_vm0, %v78_v0, -inf  ;;  %v200_v3 = vmov 0   ;;  %v73_v4 = vand.u32 127, %v72_v1  ;;  %v79_v5 = vld [vmem:[%s253_s2] sm:$0xff]  ;;  %v114_v24 = vstv %s251_s0 }
   0x3   :  { %169 = vset.pattern.permute.xlu0 %v200_v3  ;;  %vm76_vm2 = vcmask 7168   ;;  %v201_v15 = vmov 0.0   ;;  %v110_v23 = vshrl.u32 %v72_v1, 7  ;;  %s202_s0 = smov [#allocation6]  }
   0x4   :  { %82 = vmax.xlane.f32.xlu0 %v81_v2  ;;  %75 = vst.msk [vmem:[#allocation2] sm:$0xff] %vm74_vm0, %v73_v4  ;;  %s144_s16 = sshll.u32 %s202_s0, 4  ;;  %s145_s16 = int_to_ptr.vmem [resolvable:$true] %s144_s16 }
   0x5   :  { %77 = vst.msk [vmem:[#allocation3] sm:$0xff] %vm76_vm2, %v201_v15  ;;  %vm115_vm3 = vcmp.lt.s32.totalorder %v110_v23, %v114_v24  ;;  %s176_s18 = scalar_lea.vmem %s145_s16, 128  ;;  %p181_p1 = scmp.lt.s32.totalorder %s145_s16, %s145_s16 }
   0x6   :  { %p177_p0 = scmp.ne.s32.totalorder %s145_s16, %s176_s18  ;;  %p182_p2 = scmp.lt.s32.totalorder %s176_s18, %s176_s18 }
   0x8   :  { %p183_p3 = por %p182_p2, %p181_p1 }
   0xa   :  { %p184_p4 = pnand %p183_p3, %p177_p0 }
   0xb   :  { %v90_v10 = vld [vmem:[#allocation2] sm:$0xff] }
   0xc   :  { %v117_v28 = vld [vmem:[#allocation3] sm:$0xff] }
  0x1a   :  { %92 = vperm.xlu0 %169, %v79_v5  }
  0x91   :  { %v83_v6 = vpop.xlane.xlu0 %82 }
  0x92   :  { %v84_v7 = vsub.f32 %v78_v0, %v83_v6 }
  0x94   :  { %v85_v8 = vmul.f32 1.442695, %v84_v7 }
  0x96   :  { %170 = vpow2.f32 %v85_v8 }
  0x99   :  { %v93_v9 = vpop.permute.xlu0 %92 }
  0x9a   :  { %vm94_vm1 = vcmp.eq.s32.totalorder %v90_v10, %v93_v9 }
  0x9b   :  { %v95_v13 = vsel %vm94_vm1, %v84_v7, 0.0 }
  0x9c   :  { %v96_v14 = vsel %vm74_vm0, %v95_v13, 0.0 }
  0xa0   :  { %v171_v11 = vpop.eup %170 }
  0xa1   :  { %v87_v12 = vsel %vm74_vm0, %v171_v11, 0.0 }
  0xa2   :  { %88 = vadd.xlane.f32.xlu1 %v87_v12 }
  0xa6   :  { %97 = vadd.xlane.f32.xlu1 %v96_v14 }
 0x12f   :  { %v89_v16 = vpop.xlane.xlu1 %88 }
 0x130   :  { %172 = vlog2.f32 %v89_v16 }
 0x133   :  { %v98_v19 = vpop.xlane.xlu1 %97 }
 0x13a   :  { %v173_v17 = vpop.eup %172 }
 0x13b   :  { %v100_v18 = vmul.f32 0.6931472, %v173_v17 }
 0x13d   :  { %v101_v20 = vsub.f32 %v98_v19, %v100_v18 }
 0x13f   :  { %v102_v21 = vmul.f32 1.442695, %v101_v20 }
 0x141   :  { %174 = vpow2.f32 %v102_v21 }
 0x14b   :  { %v175_v22 = vpop.eup %174 }
 0x14c   :  { %v104_v25 = vsub.f32 1.0, %v175_v22 }
 0x14e   :  { %v105_v26 = vmul.f32 -0.5, %v104_v25 }
 0x150   :  { %v106_v27 = vmul.f32 %v105_v26, %v101_v20 }
 0x152   :  { %v116_v29 = vsel %vm115_vm3, %v106_v27, 0.0 }
 0x153   :  { %v118_v30 = vadd.f32 %v117_v28, %v116_v29 }
 0x155   :  { %120 = vst.msk [vmem:[#allocation3] sm:$0xff] %vm76_vm2, %v118_v30 }
 0x15c   :  { %v124_v31 = vld [vmem:[#allocation3] sm:$0xff] }
 0x15d   :  { %v125_v32 = vsel %vm76_vm2, %v124_v31, 0.0 }
 0x15e   :  { %126 = vadd.xlane.f32.xlu1 %v125_v32 }
 0x1eb   :  { %v127_v33 = vpop.xlane.xlu1 %126 }
 0x1ec   :  { %v128_v34 = vrot.slane %v127_v33, 4 }
 0x1ee   :  { %v129_v35 = vadd.f32 %v128_v34, %v127_v33 }
 0x1f0   :  { %v130_v36 = vrot.slane %v129_v35, 2 }
 0x1f2   :  { %v131_v37 = vadd.f32 %v130_v36, %v129_v35 }
 0x1f4   :  { %v132_v38 = vrot.slane %v131_v37, 1 }
 0x1f6   :  { %v133_v39 = vadd.f32 %v132_v38, %v131_v37 }
 0x1f8   :  { %164 = vpush %v133_v39 }
 0x229   :  { %s165_s17 = spop %164 }
 0x22a   :  { %v135_v40 = vstv %s165_s17 }
 0x22b   :  { %137 = vst [vmem:[#allocation6] sm:$0xff] %v135_v40 }
 0x22c   :  { %187 = shalt.err (!%p184_p4)
}
 0x22d   :  { %s188_s21 = scalar_lea.hbm %s254_s3, 128 }
 0x22e   :  { %p189_p5 = scmp.ne.s32.totalorder %s254_s3, %s188_s21  ;;  %p192_p6 = scmp.lt.u32.totalorder %s188_s21, %s254_s3 }
 0x230   :  { %p194_p7 = pnand %p192_p6, %p189_p5 }
 0x232   :  { %197 = shalt.err (!%p194_p7)
}
 0x233   :  { %147 = dma.vmem_to_hbm [thread:$0]  %s145_s16, 128, %s254_s3, [#allocation7]  }
 0x234   :  { %198 = dma.done.wait [#allocation7], 128  }
 0x235   :  { %199 = vsyncadd [#allocation7], 4294967168 }
 0x236   :  { %151 = vsyncpa [#allocation7], 1 }

</bundles_post_ra>
